<compile_context>
chip_gen: v6e
topology: v6e:2x2x1
jax: 0.10.0
libtpu: 0.0.40
codegen_flags: <defaults>
</compile_context>

<pallas_src>
import functools

import jax
import jax.numpy as jnp
from jax.experimental import pallas as pl
from jax.experimental.pallas import tpu as pltpu

LANE = 128  # TPU lane width; all packed feature dims are multiples of this.


def _round_up(x, m):
    return (x + m - 1) // m * m


# --------------------------------------------------------------------------- #
# Kernel
# --------------------------------------------------------------------------- #
def sentinel_head_kernel(
    g_ref,                      # (TB, 2H)     global embedding tile
    p_ref,                      # (TB, H//2)   path embedding tile
    wag_ref, wap_ref, ba_ref,   # fused [gate | fusion1] weight (K-split) + bias
    w2_ref, b2_ref,             # fusion 2   (lane-padded)
    wc1_ref, bc1_ref,           # classifier 1 (lane-padded)
    wc2_ref, bc2_ref,           # classifier 2 (lane-padded classes)
    out_ref,                    # (TB, C)      unpadded class logits
    *,
    gate_width,                 # static: multiple of 128, = round_up(H, 128)
    num_classes,                # static: true class count C
):
    wdt = wag_ref.dtype  # bf16 is MXU-native on all generations; f32 for exact checks

    g = g_ref[...]
    p = p_ref[...]
    if g.dtype != wdt:  # no-op when the producer already emits the MXU dtype
        g = g.astype(wdt)
    if p.dtype != wdt:
        p = p.astype(wdt)

    # Fused gate + fusion-1 matmul.  K is split between the two embeddings so
    # no concatenated activation ever touches HBM; N = gate_width + h_width,
    # both multiples of 128, so the split below is vreg-aligned.
    a = (
        jnp.dot(g, wag_ref[...], preferred_element_type=jnp.float32)
        + jnp.dot(p, wap_ref[...], preferred_element_type=jnp.float32)
        + ba_ref[...]
    )

    gate = jax.nn.sigmoid(a[:, :gate_width])   # padded lanes -> sigmoid(0)=0.5 (killed below)
    h = jnp.maximum(a[:, gate_width:], 0.0)    # padded lanes -> 0 ; Dropout == identity

    # fusion 2: padded output lanes are exactly 0 (zero weight cols / zero bias)
    fused = (
        jnp.dot(h.astype(wdt), w2_ref[...], preferred_element_type=jnp.float32)
        + b2_ref[...]
    )
    gated = gate * fused                       # padded lanes: 0.5 * 0 = 0

    # classifier
    c = jnp.maximum(
        jnp.dot(gated.astype(wdt), wc1_ref[...], preferred_element_type=jnp.float32)
        + bc1_ref[...],
        0.0,
    )
    out = (
        jnp.dot(c.astype(wdt), wc2_ref[...], preferred_element_type=jnp.float32)
        + bc2_ref[...]
    )
    # Store only the real classes: (TB, C) block == full last dim -> one
    # contiguous (masked) store, no padded f32 slab in HBM.
    out_ref[...] = out[:, :num_classes].astype(out_ref.dtype)


# --------------------------------------------------------------------------- #
# Parameter packing (done once; zero padding is numerically exact)
# --------------------------------------------------------------------------- #
def pack_params(p, weight_dtype=jnp.bfloat16):
    """Zero-pad / fuse the PyTorch-layout params into 128-lane-aligned tiles."""
    fusion_dim, H = p["wg"].shape
    twoH = p["w1"].shape[1]
    Hh = p["wc1"].shape[1]
    C = p["wc2"].shape[1]
    assert twoH == 2 * H and fusion_dim == 2 * H + H // 2

    gate_w = _round_up(H, LANE)      # padded gate width (== padded fused width)
    h_w = _round_up(twoH, LANE)      # padded hidden width of fusion-1 output
    c1_w = _round_up(Hh, LANE)       # padded classifier-hidden width
    out_w = _round_up(C, LANE)       # padded class width for the final matmul

    def zpad(w, rows, cols):
        return jnp.pad(w, ((0, rows - w.shape[0]), (0, cols - w.shape[1])))

    # Fused [gate (->H) | fusion1 (->2H)] weight; each half lane-padded so the
    # in-kernel split is at a 128-lane boundary.  Rows split by K: the first
    # 2H rows multiply global_emb, the remaining H/2 rows multiply path_emb.
    w_a = jnp.concatenate(
        [zpad(p["wg"], fusion_dim, gate_w), zpad(p["w1"], fusion_dim, h_w)], axis=1
    )
    b_a = jnp.concatenate([zpad(p["bg"], 1, gate_w), zpad(p["b1"], 1, h_w)], axis=1)

    return dict(
        w_a_g=w_a[:twoH].astype(weight_dtype),   # (2H,   gate_w + h_w)
        w_a_p=w_a[twoH:].astype(weight_dtype),   # (H//2, gate_w + h_w)
        b_a=b_a,                                 # (1, gate_w + h_w) f32
        w2=zpad(p["w2"], h_w, gate_w).astype(weight_dtype),
        b2=zpad(p["b2"], 1, gate_w),
        wc1=zpad(p["wc1"], gate_w, c1_w).astype(weight_dtype),
        bc1=zpad(p["bc1"], 1, c1_w),
        wc2=zpad(p["wc2"], c1_w, out_w).astype(weight_dtype),
        bc2=zpad(p["bc2"], 1, out_w),
        gate_width=gate_w,
        num_classes=C,
    )


# --------------------------------------------------------------------------- #
# Wrapper
# --------------------------------------------------------------------------- #
def sentinel_head(global_emb, path_emb, packed, *, tile_b=2048, min_grid_steps=2):
    """global_emb: (B, 2H), path_emb: (B, H//2) -> logits (B, C)."""
    B, twoH = global_emb.shape
    Hh = path_emb.shape[1]
    C = packed["num_classes"]
    gate_width = packed["gate_width"]
    h_w = packed["w2"].shape[0]
    c1_w = packed["wc1"].shape[1]
    out_w = packed["wc2"].shape[1]

    # Sublane-aligned batch tile: 8 rows for f32 tiles, 16 for bf16 tiles.
    itemsize = min(global_emb.dtype.itemsize, path_emb.dtype.itemsize)
    sub = 16 if itemsize < 4 else 8
    # Aim for >= min_grid_steps grid steps (keeps both v7x TCs busy) while
    # capping the tile at the requested size; steps of >=2 MB amortize the
    # per-step pipeline overhead on every generation.
    min_grid_steps = max(1, int(min_grid_steps))
    tb = min(int(tile_b), _round_up(pl.cdiv(B, min_grid_steps), sub))
    tile_b = max(sub, _round_up(tb, sub))

    Bp = _round_up(B, tile_b)
    if Bp != B:
        global_emb = jnp.pad(global_emb, ((0, Bp - B), (0, 0)))
        path_emb = jnp.pad(path_emb, ((0, Bp - B), (0, 0)))
    grid = (Bp // tile_b,)

    weight_names = ("w_a_g", "w_a_p", "b_a", "w2", "b2", "wc1", "bc1", "wc2", "bc2")
    weights = [packed[k] for k in weight_names]

    def resident(a):  # same block index every step -> fetched once, stays in VMEM
        return pl.BlockSpec(a.shape, lambda i: (0, 0))

    # Advisory cost estimate so XLA schedules neighbors around this call.
    weight_bytes = sum(int(w.size) * w.dtype.itemsize for w in weights)
    in_bytes = (int(global_emb.size) * global_emb.dtype.itemsize
                + int(path_emb.size) * path_emb.dtype.itemsize)
    out_bytes = Bp * C * 4
    flops = 2 * Bp * ((twoH + Hh) * (gate_width + h_w)
                      + h_w * gate_width + gate_width * c1_w + c1_w * out_w)
    cost = pl.CostEstimate(
        flops=int(flops),
        transcendentals=int(Bp * gate_width),          # sigmoid
        bytes_accessed=int(in_bytes + out_bytes + weight_bytes),
    )

    out = pl.pallas_call(
        functools.partial(
            sentinel_head_kernel, gate_width=gate_width, num_classes=C
        ),
        out_shape=jax.ShapeDtypeStruct((Bp, C), jnp.float32),
        grid=grid,
        in_specs=[
            pl.BlockSpec((tile_b, twoH), lambda i: (i, 0)),
            pl.BlockSpec((tile_b, Hh), lambda i: (i, 0)),
        ]
        + [resident(w) for w in weights],
        # Full-last-dim (tile_b, C) block: contiguous DMA, no padded slab.
        out_specs=pl.BlockSpec((tile_b, C), lambda i: (i, 0)),
        compiler_params=pltpu.CompilerParams(
            # batch tiles are independent -> shard across both TCs on v7x
            dimension_semantics=("parallel",),
        ),
        cost_estimate=cost,
    )(global_emb, path_emb, *weights)

    return out[:B]  # drop batch padding rows (no-op when Bp == B)


# --------------------------------------------------------------------------- #
# Params + pure-JAX reference
# --------------------------------------------------------------------------- #
def init_params(key, hidden_dim=32, num_classes=2):
    H = hidden_dim
    fusion_dim = 2 * H + H // 2
    keys = jax.random.split(key, 10)

    def lin(kw, kb, fan_in, fan_out):
        bound = 1.0 / jnp.sqrt(fan_in)
        w = jax.random.uniform(kw, (fan_in, fan_out), jnp.float32, -bound, bound)
        b = jax.random.uniform(kb, (1, fan_out), jnp.float32, -bound, bound)
        return w, b

    wg, bg = lin(keys[0], keys[1], fusion_dim, H)
    w1, b1 = lin(keys[2], keys[3], fusion_dim, 2 * H)
    w2, b2 = lin(keys[4], keys[5], 2 * H, H)
    wc1, bc1 = lin(keys[6], keys[7], H, H // 2)
    wc2, bc2 = lin(keys[8], keys[9], H // 2, num_classes)
    return dict(wg=wg, bg=bg, w1=w1, b1=b1, w2=w2, b2=b2,
                wc1=wc1, bc1=bc1, wc2=wc2, bc2=bc2)


def reference(global_emb, path_emb, p):
    x = jnp.concatenate([global_emb, path_emb], axis=1)
    gate = jax.nn.sigmoid(x @ p["wg"] + p["bg"])
    h = jnp.maximum(x @ p["w1"] + p["b1"], 0.0)
    fused = h @ p["w2"] + p["b2"]
    gated = gate * fused
    c = jnp.maximum(gated @ p["wc1"] + p["bc1"], 0.0)
    return c @ p["wc2"] + p["bc2"]


# --------------------------------------------------------------------------- #
if __name__ == "__main__":
    hidden_dim = 32
    num_classes = 2
    batch = 16

    key = jax.random.PRNGKey(0)
    k_params, k_glob, k_path = jax.random.split(key, 3)
    params = init_params(k_params, hidden_dim, num_classes)

    # TODO(synk): GlobalGNN / PathGNN are undefined in the provided source;
    # their output embeddings are deterministic stand-ins here.
    global_emb = jax.random.normal(k_glob, (batch, 2 * hidden_dim), jnp.float32)
    path_emb = jax.random.normal(k_path, (batch, hidden_dim // 2), jnp.float32)

    ref = reference(global_emb, path_emb, params)

    # f32 weights: exact check (grid gets 2 steps at this tiny batch).
    packed_f32 = pack_params(params, weight_dtype=jnp.float32)
    out = sentinel_head(global_emb, path_emb, packed_f32)
    out = jax.block_until_ready(out)
    assert out.shape == (batch, num_classes)
    assert jnp.allclose(out, ref, atol=1e-4, rtol=1e-4), "f32 kernel mismatch vs reference"

    # bf16 weights (default packing; MXU-native on v5e/v6e/v7x) with f32
    # activations and f32 accumulation / elementwise math.
    packed_bf16 = pack_params(params)  # bfloat16 default
    out_bf16 = sentinel_head(global_emb, path_emb, packed_bf16)
    out_bf16 = jax.block_until_ready(out_bf16)
    assert out_bf16.shape == (batch, num_classes)
    assert jnp.allclose(out_bf16, ref, atol=5e-2, rtol=5e-2), "bf16 kernel mismatch vs reference"

    # bf16 activations from the (stand-in) producer: halves input HBM traffic,
    # no in-kernel cast.  Compare against the reference fed the same rounded
    # inputs so only the bf16-weight matmul tolerance remains.
    g_bf = global_emb.astype(jnp.bfloat16)
    p_bf = path_emb.astype(jnp.bfloat16)
    ref_bf = reference(g_bf.astype(jnp.float32), p_bf.astype(jnp.float32), params)
    out_bf_act = sentinel_head(g_bf, p_bf, packed_bf16)
    out_bf_act = jax.block_until_ready(out_bf_act)
    assert out_bf_act.shape == (batch, num_classes)
    assert jnp.allclose(out_bf_act, ref_bf, atol=5e-2, rtol=5e-2), \
        "bf16-activation kernel mismatch vs reference"

    print("KERNEL_OK")
</pallas_src>

<mosaic_0001>
module attributes {stable_mosaic.version = 11 : i64} {
  func.func @sentinel_head_kernel(%arg0: i32, %arg1: memref<8x64xf32, #tpu.memory_space<vmem>>, %arg2: memref<8x16xf32, #tpu.memory_space<vmem>>, %arg3: memref<64x256xf32, #tpu.memory_space<vmem>>, %arg4: memref<16x256xf32, #tpu.memory_space<vmem>>, %arg5: memref<1x256xf32, #tpu.memory_space<vmem>>, %arg6: memref<128x128xf32, #tpu.memory_space<vmem>>, %arg7: memref<1x128xf32, #tpu.memory_space<vmem>>, %arg8: memref<128x128xf32, #tpu.memory_space<vmem>>, %arg9: memref<1x128xf32, #tpu.memory_space<vmem>>, %arg10: memref<128x128xf32, #tpu.memory_space<vmem>>, %arg11: memref<1x128xf32, #tpu.memory_space<vmem>>, %arg12: memref<8x2xf32, #tpu.memory_space<vmem>>) attributes {dimension_semantics = [#tpu.dimension_semantics<parallel>], iteration_bounds = array<i64: 2>, scalar_prefetch = 0 : i64, scratch_operands = 0 : i64, tpu.core_type = #tpu.core_type<tc>, window_params = [{transform_indices = @transform_0, window_bounds = array<i64: 8, 64>}, {transform_indices = @transform_1, window_bounds = array<i64: 8, 16>}, {pipeline_mode = #tpu.pipeline_mode<synchronous>, transform_indices = @transform_2, window_bounds = array<i64: 64, 256>}, {pipeline_mode = #tpu.pipeline_mode<synchronous>, transform_indices = @transform_3, window_bounds = array<i64: 16, 256>}, {pipeline_mode = #tpu.pipeline_mode<synchronous>, transform_indices = @transform_4, window_bounds = array<i64: 1, 256>}, {pipeline_mode = #tpu.pipeline_mode<synchronous>, transform_indices = @transform_5, window_bounds = array<i64: 128, 128>}, {pipeline_mode = #tpu.pipeline_mode<synchronous>, transform_indices = @transform_6, window_bounds = array<i64: 1, 128>}, {pipeline_mode = #tpu.pipeline_mode<synchronous>, transform_indices = @transform_7, window_bounds = array<i64: 128, 128>}, {pipeline_mode = #tpu.pipeline_mode<synchronous>, transform_indices = @transform_8, window_bounds = array<i64: 1, 128>}, {pipeline_mode = #tpu.pipeline_mode<synchronous>, transform_indices = @transform_9, window_bounds = array<i64: 128, 128>}, {pipeline_mode = #tpu.pipeline_mode<synchronous>, transform_indices = @transform_10, window_bounds = array<i64: 1, 128>}, {transform_indices = @transform_11, window_bounds = array<i64: 8, 2>}]} {
    %c0 = arith.constant 0 : index
    %c0_0 = arith.constant 0 : index
    %0 = vector.load %arg1[%c0, %c0_0] : memref<8x64xf32, #tpu.memory_space<vmem>>, vector<8x64xf32>
    %c0_1 = arith.constant 0 : index
    %c0_2 = arith.constant 0 : index
    %1 = vector.load %arg2[%c0_1, %c0_2] : memref<8x16xf32, #tpu.memory_space<vmem>>, vector<8x16xf32>
    %c0_3 = arith.constant 0 : index
    %c0_4 = arith.constant 0 : index
    %2 = vector.load %arg3[%c0_3, %c0_4] : memref<64x256xf32, #tpu.memory_space<vmem>>, vector<64x256xf32>
    %cst = arith.constant dense<0.000000e+00> : vector<8x256xf32>
    %3 = tpu.matmul %0, %2, %cst {dimension_numbers = #tpu.dot_dimension_numbers<[1], [0], [0], [1], [0, 0, 1, 1], [], []>} : vector<8x64xf32>, vector<64x256xf32>, vector<8x256xf32> -> vector<8x256xf32>
    %c0_5 = arith.constant 0 : index
    %c0_6 = arith.constant 0 : index
    %4 = vector.load %arg4[%c0_5, %c0_6] : memref<16x256xf32, #tpu.memory_space<vmem>>, vector<16x256xf32>
    %cst_7 = arith.constant dense<0.000000e+00> : vector<8x256xf32>
    %5 = tpu.matmul %1, %4, %cst_7 {dimension_numbers = #tpu.dot_dimension_numbers<[1], [0], [0], [1], [0, 0, 1, 1], [], []>} : vector<8x16xf32>, vector<16x256xf32>, vector<8x256xf32> -> vector<8x256xf32>
    %6 = arith.addf %3, %5 : vector<8x256xf32>
    %c0_8 = arith.constant 0 : index
    %c0_9 = arith.constant 0 : index
    %7 = vector.load %arg5[%c0_8, %c0_9] : memref<1x256xf32, #tpu.memory_space<vmem>>, vector<1x256xf32>
    %8 = vector.broadcast %7 : vector<1x256xf32> to vector<8x256xf32>
    %9 = arith.addf %6, %8 : vector<8x256xf32>
    %10 = vector.extract_strided_slice %9 {offsets = [0, 0], sizes = [8, 128], strides = [1, 1]} : vector<8x256xf32> to vector<8x128xf32>
    %11 = arith.negf %10 : vector<8x128xf32>
    %12 = math.exp %11 : vector<8x128xf32>
    %cst_10 = arith.constant 1.000000e+00 : f32
    %13 = vector.broadcast %cst_10 : f32 to vector<8x128xf32>
    %14 = arith.addf %13, %12 : vector<8x128xf32>
    %15 = arith.divf %13, %14 : vector<8x128xf32>
    %16 = vector.extract_strided_slice %9 {offsets = [0, 128], sizes = [8, 128], strides = [1, 1]} : vector<8x256xf32> to vector<8x128xf32>
    %cst_11 = arith.constant 0.000000e+00 : f32
    %17 = vector.broadcast %cst_11 : f32 to vector<8x128xf32>
    %18 = arith.maximumf %16, %17 : vector<8x128xf32>
    %c0_12 = arith.constant 0 : index
    %c0_13 = arith.constant 0 : index
    %19 = vector.load %arg6[%c0_12, %c0_13] : memref<128x128xf32, #tpu.memory_space<vmem>>, vector<128x128xf32>
    %cst_14 = arith.constant dense<0.000000e+00> : vector<8x128xf32>
    %20 = tpu.matmul %18, %19, %cst_14 {dimension_numbers = #tpu.dot_dimension_numbers<[1], [0], [0], [1], [0, 0, 1, 1], [], []>} : vector<8x128xf32>, vector<128x128xf32>, vector<8x128xf32> -> vector<8x128xf32>
    %c0_15 = arith.constant 0 : index
    %c0_16 = arith.constant 0 : index
    %21 = vector.load %arg7[%c0_15, %c0_16] : memref<1x128xf32, #tpu.memory_space<vmem>>, vector<1x128xf32>
    %22 = vector.broadcast %21 : vector<1x128xf32> to vector<8x128xf32>
    %23 = arith.addf %20, %22 : vector<8x128xf32>
    %24 = arith.mulf %15, %23 : vector<8x128xf32>
    %c0_17 = arith.constant 0 : index
    %c0_18 = arith.constant 0 : index
    %25 = vector.load %arg8[%c0_17, %c0_18] : memref<128x128xf32, #tpu.memory_space<vmem>>, vector<128x128xf32>
    %cst_19 = arith.constant dense<0.000000e+00> : vector<8x128xf32>
    %26 = tpu.matmul %24, %25, %cst_19 {dimension_numbers = #tpu.dot_dimension_numbers<[1], [0], [0], [1], [0, 0, 1, 1], [], []>} : vector<8x128xf32>, vector<128x128xf32>, vector<8x128xf32> -> vector<8x128xf32>
    %c0_20 = arith.constant 0 : index
    %c0_21 = arith.constant 0 : index
    %27 = vector.load %arg9[%c0_20, %c0_21] : memref<1x128xf32, #tpu.memory_space<vmem>>, vector<1x128xf32>
    %28 = vector.broadcast %27 : vector<1x128xf32> to vector<8x128xf32>
    %29 = arith.addf %26, %28 : vector<8x128xf32>
    %cst_22 = arith.constant 0.000000e+00 : f32
    %30 = vector.broadcast %cst_22 : f32 to vector<8x128xf32>
    %31 = arith.maximumf %29, %30 : vector<8x128xf32>
    %c0_23 = arith.constant 0 : index
    %c0_24 = arith.constant 0 : index
    %32 = vector.load %arg10[%c0_23, %c0_24] : memref<128x128xf32, #tpu.memory_space<vmem>>, vector<128x128xf32>
    %cst_25 = arith.constant dense<0.000000e+00> : vector<8x128xf32>
    %33 = tpu.matmul %31, %32, %cst_25 {dimension_numbers = #tpu.dot_dimension_numbers<[1], [0], [0], [1], [0, 0, 1, 1], [], []>} : vector<8x128xf32>, vector<128x128xf32>, vector<8x128xf32> -> vector<8x128xf32>
    %c0_26 = arith.constant 0 : index
    %c0_27 = arith.constant 0 : index
    %34 = vector.load %arg11[%c0_26, %c0_27] : memref<1x128xf32, #tpu.memory_space<vmem>>, vector<1x128xf32>
    %35 = vector.broadcast %34 : vector<1x128xf32> to vector<8x128xf32>
    %36 = arith.addf %33, %35 : vector<8x128xf32>
    %37 = vector.extract_strided_slice %36 {offsets = [0, 0], sizes = [8, 2], strides = [1, 1]} : vector<8x128xf32> to vector<8x2xf32>
    %c0_28 = arith.constant 0 : index
    %c0_29 = arith.constant 0 : index
    %38 = vector.load %arg12[%c0_28, %c0_29] : memref<8x2xf32, #tpu.memory_space<vmem>>, vector<8x2xf32>
    tpu.vector_store %arg12[%c0_28, %c0_29], %37 {strides = array<i32>} : memref<8x2xf32, #tpu.memory_space<vmem>>, vector<8x2xf32>,
    return
  }
  func.func @transform_0(%arg0: i32) -> (i32, i32) {
    %c0_i32 = arith.constant 0 : i32
    %c0_i32_0 = arith.constant 0 : i32
    return %arg0, %c0_i32 : i32, i32
  }
  func.func @transform_1(%arg0: i32) -> (i32, i32) {
    %c0_i32 = arith.constant 0 : i32
    %c0_i32_0 = arith.constant 0 : i32
    return %arg0, %c0_i32 : i32, i32
  }
  func.func @transform_2(%arg0: i32) -> (i32, i32) {
    %c0_i32 = arith.constant 0 : i32
    %c0_i32_0 = arith.constant 0 : i32
    %c0_i32_1 = arith.constant 0 : i32
    return %c0_i32, %c0_i32_0 : i32, i32
  }
  func.func @transform_3(%arg0: i32) -> (i32, i32) {
    %c0_i32 = arith.constant 0 : i32
    %c0_i32_0 = arith.constant 0 : i32
    %c0_i32_1 = arith.constant 0 : i32
    return %c0_i32, %c0_i32_0 : i32, i32
  }
  func.func @transform_4(%arg0: i32) -> (i32, i32) {
    %c0_i32 = arith.constant 0 : i32
    %c0_i32_0 = arith.constant 0 : i32
    %c0_i32_1 = arith.constant 0 : i32
    return %c0_i32, %c0_i32_0 : i32, i32
  }
  func.func @transform_5(%arg0: i32) -> (i32, i32) {
    %c0_i32 = arith.constant 0 : i32
    %c0_i32_0 = arith.constant 0 : i32
    %c0_i32_1 = arith.constant 0 : i32
    return %c0_i32, %c0_i32_0 : i32, i32
  }
  func.func @transform_6(%arg0: i32) -> (i32, i32) {
    %c0_i32 = arith.constant 0 : i32
    %c0_i32_0 = arith.constant 0 : i32
    %c0_i32_1 = arith.constant 0 : i32
    return %c0_i32, %c0_i32_0 : i32, i32
  }
  func.func @transform_7(%arg0: i32) -> (i32, i32) {
    %c0_i32 = arith.constant 0 : i32
    %c0_i32_0 = arith.constant 0 : i32
    %c0_i32_1 = arith.constant 0 : i32
    return %c0_i32, %c0_i32_0 : i32, i32
  }
  func.func @transform_8(%arg0: i32) -> (i32, i32) {
    %c0_i32 = arith.constant 0 : i32
    %c0_i32_0 = arith.constant 0 : i32
    %c0_i32_1 = arith.constant 0 : i32
    return %c0_i32, %c0_i32_0 : i32, i32
  }
  func.func @transform_9(%arg0: i32) -> (i32, i32) {
    %c0_i32 = arith.constant 0 : i32
    %c0_i32_0 = arith.constant 0 : i32
    %c0_i32_1 = arith.constant 0 : i32
    return %c0_i32, %c0_i32_0 : i32, i32
  }
  func.func @transform_10(%arg0: i32) -> (i32, i32) {
    %c0_i32 = arith.constant 0 : i32
    %c0_i32_0 = arith.constant 0 : i32
    %c0_i32_1 = arith.constant 0 : i32
    return %c0_i32, %c0_i32_0 : i32, i32
  }
  func.func @transform_11(%arg0: i32) -> (i32, i32) {
    %c0_i32 = arith.constant 0 : i32
    %c0_i32_0 = arith.constant 0 : i32
    return %arg0, %c0_i32 : i32, i32
  }
}

</mosaic_0001>

<bundles_post_ra>
// kernel: tpu_custom_call.1
= control target key start
LH: loop header
LB: loop body
LE: loop exit
PB: predicated region body
PF: predicated region fallthrough
CT: control target
= control target key end

     0   :  { %s2026_s0 = inlined_call_operand.hbm [shape: f32[16,64], index: 0, kind: input, shape index: {}]   ;;  %s2027_s1 = inlined_call_operand.hbm [shape: f32[16,16], index: 1, kind: input, shape index: {}]   ;;  %s2028_s2 = inlined_call_operand.hbm [shape: f32[64,256], index: 2, kind: input, shape index: {}]   ;;  %s2029_s3 = inlined_call_operand.hbm [shape: f32[16,256], index: 3, kind: input, shape index: {}]   ;;  %s2030_s4 = inlined_call_operand.vmem [shape: f32[1,256], index: 4, kind: input, shape index: {}]   ;;  %s2031_s5 = inlined_call_operand.hbm [shape: f32[128,128], index: 5, kind: input, shape index: {}]   ;;  %s2032_s6 = inlined_call_operand.vmem [shape: f32[1,128], index: 6, kind: input, shape index: {}]   ;;  %s2033_s7 = inlined_call_operand.hbm [shape: f32[128,128], index: 7, kind: input, shape index: {}]   ;;  %s2034_s8 = inlined_call_operand.vmem [shape: f32[1,128], index: 8, kind: input, shape index: {}]   ;;  %s2035_s9 = inlined_call_operand.hbm [shape: f32[128,128], index: 9, kind: input, shape index: {}]   ;;  %s2036_s10 = inlined_call_operand.vmem [shape: f32[1,128], index: 10, kind: input, shape index: {}]   ;;  %s2037_s11 = inlined_call_operand.vmem [shape: f32[16,2], index: 11, kind: output, shape index: {}]  }
   0x1   :  { %2041 = sst [smem:[#allocation18_spill]] %s2028_s2 }
   0x2   :  { %2042 = sst [smem:[#allocation19_spill]] %s2029_s3 }
   0x3   :  { %2043 = sst [smem:[#allocation20_spill]] %s2031_s5 }
   0x4   :  { %2044 = sst [smem:[#allocation21_spill]] %s2033_s7 }
   0x5   :  { %2045 = sst [smem:[#allocation22_spill]] %s2035_s9 }
   0x6   :  { %16 = vsyncpa [#allocation3], 0 }
   0x7   :  { %18 = vsyncpa [#allocation3 + $0x1], 0 }
   0x8   :  { %19 = vsyncpa [#allocation5], 0 }
   0x9   :  { %21 = vsyncpa [#allocation5 + $0x1], 0 }
   0xa   :  { %22 = vsyncpa [#allocation8], 0 }
   0xb   :  { %23 = vsyncpa [#allocation11], 0  ;;  %s1723_s17 = smov 0   ;;  %s1725_s18 = smov 0  }
   0xc   :  { %s1727_s19 = smov 0   ;;  %s1729_s20 = smov 0  }
   0xd LB: > { %s1650_s21 = smov [#allocation6]   ;;  %s1744_s23 = sadd.s32 4294967295, %s1648_s20   ;;  %s1648_s20 = sphi %s1729_s20, %s2068_s20   ;;  %s1644_s19 = sphi %s1727_s19, %s2067_s19   ;;  %s1640_s18 = sphi %s1725_s18, %s2066_s18   ;;  %s1636_s17 = sphi %s1723_s17, %s2065_s17  }
   0xe   : > { %s313_s22 = sshll.u32 %s1650_s21, 4  ;;  %p1123_p0 = scmp.ge.s32.totalorder %s1648_s20, 1  ;;  %s314_s22 = int_to_ptr.vmem [resolvable:$true] %s313_s22 }
   0xf   : > { %p2038_p1 = scmp.eq.s32.totalorder %s1744_s23, 0  ;;  %p301_p2 = scmp.lt.s32.totalorder %s1648_s20, 3 }
  0x10   : > { %s1651_s25 = smov [#allocation7]   ;;  %s1652_s28 = smov [#allocation10]  }
  0x11   : > { %p1749_p3 = pnand %p1123_p0, %p301_p2  ;;  %s326_s26 = sshll.u32 %s1651_s25, 4  ;;  %s327_s26 = int_to_ptr.vmem [resolvable:$true] %s326_s26 }
  0x12   : > { %s358_s29 = sshll.u32 %s1652_s28, 4  ;;  %s1423_s12 = scalar_lea.vmem %s314_s22, 2048  ;;  %s359_s29 = int_to_ptr.vmem [resolvable:$true] %s358_s29 }
  0x13   : > { %s2046_s24 = scalar_select %p1749_p3, 1, 0 }
  0x14   : > { %p1331_p4 = pneg %p1749_p3  ;;  %p1424_p7 = scmp.ne.s32.totalorder %s314_s22, %s1423_s12 }
  0x15   : > { %p1431_p10 = scmp.lt.s32.totalorder %s314_s22, %s314_s22  ;;  %p1432_p11 = scmp.lt.s32.totalorder %s1423_s12, %s1423_s12 }
  0x16   : > { %p1757_p5 = pnand %p1331_p4, %p2038_p1 }
  0x17   : > { %p1433_p12 = por %p1432_p11, %p1431_p10 }
  0x18   : > { %p1763_p6 = pneg %p1757_p5 }
  0x1a   : > { %p1426_p8 = pnand %p1424_p7, %p1763_p6 }
  0x1c   : > { %p1427_p9 = pneg %p1426_p8 }
  0x1e   : > { %p1434_p13 = pnand %p1433_p12, %p1427_p9 }
  0x20   : > { %1437 = shalt.err (!%p1434_p13)
}
  0x21   : > { %s1653_s13 = smov 256   ;;  %s1654_s14 = smov 16  }
  0x22   : > { %s2049_s2 = sld [smem:[#allocation18_spill]]  ;;  %s1449_s21 = scalar_lea.vmem %s327_s26, 512 }
  0x23   : > { %p1450_p0 = scmp.ne.s32.totalorder %s327_s26, %s1449_s21  ;;  %p1457_p7 = scmp.lt.s32.totalorder %s327_s26, %s327_s26 }
  0x24   : > { %p1458_p8 = scmp.lt.s32.totalorder %s1449_s21, %s1449_s21 }
  0x25   : > { %p1452_p2 = pnand %p1450_p0, %p1763_p6 }
  0x26   : > { %p1459_p1 = por %p1458_p8, %p1457_p7 }
  0x27   : > { %p1453_p4 = pneg %p1452_p2 }
  0x28   : > { %1334 = dma.hbm_to_vmem [thread:$0]  (!%p1757_p5), %s2049_s2, 2048, %s314_s22, [#allocation5], %s1653_s13, %s1653_s13, %s1654_s14  }
  0x29   : > { %p1460_p10 = pnand %p1459_p1, %p1453_p4 }
  0x2b   : > { %1463 = shalt.err (!%p1460_p10)
}
  0x2c   : > { %s2050_s3 = sld [smem:[#allocation19_spill]]  ;;  %s1475_s12 = scalar_lea.vmem %s359_s29, 2048 }
  0x2d   : > { %p1476_p9 = scmp.ne.s32.totalorder %s359_s29, %s1475_s12  ;;  %p1483_p13 = scmp.lt.s32.totalorder %s359_s29, %s359_s29 }
  0x2e   : > { %p1484_p0 = scmp.lt.s32.totalorder %s1475_s12, %s1475_s12 }
  0x2f   : > { %p1478_p11 = pnand %p1476_p9, %p1763_p6 }
  0x30   : > { %p1485_p2 = por %p1484_p0, %p1483_p13 }
  0x31   : > { %p1479_p12 = pneg %p1478_p11 }
  0x32   : > { %1337 = dma.hbm_to_vmem [thread:$0]  (!%p1757_p5), %s2050_s3, 512, %s327_s26, [#allocation8], %s1653_s13, %s1653_s13, %s1654_s14  }
  0x33   : > { %p1486_p3 = pnand %p1485_p2, %p1479_p12 }
  0x35   : > { %1489 = shalt.err (!%p1486_p3)
}
  0x36   : > { %s1655_s22 = smov 128   ;;  %s1656_s15 = smov 8  }
  0x37   : > { %s2051_s7 = sld [smem:[#allocation21_spill]]  ;;  %s1657_s14 = smov [#allocation9]  }
  0x38   : > { %s342_s16 = sshll.u32 %s1657_s14, 4  ;;  %s1658_s21 = smov [#allocation12]   ;;  %s343_s16 = int_to_ptr.vmem [resolvable:$true] %s342_s16 }
  0x39   : > { %s374_s25 = sshll.u32 %s1658_s21, 4  ;;  %s1501_s28 = scalar_lea.vmem %s343_s16, 2048  ;;  %s375_s25 = int_to_ptr.vmem [resolvable:$true] %s374_s25 }
  0x3a   : > { %p1502_p1 = scmp.ne.s32.totalorder %s343_s16, %s1501_s28  ;;  %p1509_p7 = scmp.lt.s32.totalorder %s343_s16, %s343_s16 }
  0x3b   : > { %p1510_p8 = scmp.lt.s32.totalorder %s1501_s28, %s1501_s28 }
  0x3c   : > { %p1504_p3 = pnand %p1502_p1, %p1763_p6 }
  0x3d   : > { %1343 = dma.hbm_to_vmem [thread:$0]  (!%p1757_p5), %s2051_s7, 2048, %s359_s29, [#allocation11], %s1655_s22, %s1655_s22, %s1656_s15  }
  0x3e   : > { %p1505_p4 = pneg %p1504_p3  ;;  %p1511_p10 = por %p1510_p8, %p1509_p7 }
  0x40   : > { %p1512_p9 = pnand %p1511_p10, %p1505_p4 }
  0x42   : > { %1515 = shalt.err (!%p1512_p9)
}
  0x43   : > { %s2052_s5 = sld [smem:[#allocation20_spill]]  ;;  %s1527_s26 = scalar_lea.vmem %s375_s25, 2048 }
  0x44   : > { %p1528_p11 = scmp.ne.s32.totalorder %s375_s25, %s1527_s26  ;;  %p1535_p0 = scmp.lt.s32.totalorder %s375_s25, %s375_s25 }
  0x45   : > { %p1536_p2 = scmp.lt.s32.totalorder %s1527_s26, %s1527_s26 }
  0x46   : > { %p1530_p12 = pnand %p1528_p11, %p1763_p6 }
  0x47   : > { %p1537_p1 = por %p1536_p2, %p1535_p0 }
  0x48   : > { %p1531_p13 = pneg %p1530_p12 }
  0x49   : > { %1340 = dma.hbm_to_vmem [thread:$0]  (!%p1757_p5), %s2052_s5, 2048, %s343_s16, [#allocation8], %s1655_s22, %s1655_s22, %s1656_s15  }
  0x4a   : > { %p1538_p3 = pnand %p1537_p1, %p1531_p13 }
  0x4c   : > { %1541 = shalt.err (!%p1538_p3)
}
  0x4d   : > { %s2053_s9 = sld [smem:[#allocation22_spill]]  ;;  %s1812_s27 = sadd.s32 1, %s1648_s20  }
  0x4e   : > { %s33_s30 = ssub.s32 %s1648_s20, %s1812_s27  ;;  %s36_s16 = sadd.s32 1, %s1644_s19 }
  0x4f   : > { %p34_p6 = scmp.eq.s32.totalorder %s33_s30, 0  ;;  %p43_p4 = scmp.ne.s32.totalorder %s1644_s19, %s1640_s18 }
  0x50   : > { %p44_p7 = scmp.eq.s32.totalorder %s1648_s20, 0  ;;  %p49_p8 = scmp.ne.s32.totalorder %s1640_s18, %s1636_s17 }
  0x51   : > { %s1823_s21 = scalar_select %p34_p6, %s1644_s19, %s36_s16  }
  0x52   : > { %p45_p10 = por %p44_p7, %p43_p4  ;;  %p2054_p9 = scmp.eq.s32.totalorder %s1744_s23, 0 }
  0x53   : > { %1346 = dma.hbm_to_vmem [thread:$0]  (!%p1757_p5), %s2053_s9, 2048, %s375_s25, [#allocation11], %s1655_s22, %s1655_s22, %s1656_s15  }
  0x54   : > { %p1827_p11 = por %p2054_p9, %p49_p8  ;;  %p1359_p12 = scmp.lt.s32.totalorder %s1648_s20, 2 }
  0x55   : > { %s391_s22 = sand.u32 1, %s1644_s19   ;;  %s1131_s25 = sshll.u32 %s1648_s20, 7 }
  0x56   : > { %s2055_s28 = scalar_select %p1827_p11, 1, 0 }
  0x57   : > { %s1833_s15 = sshll.u32 %s391_s22, 3  ;;  %s1839_s26 = scalar_lea.hbm %s2026_s0, %s1131_s25 }
  0x58   : > { %s395_s17 = scalar_lea.vmem [#allocation2], %s1833_s15  ;;  %p1844_p5 = pnand %p1359_p12, %p45_p10 }
  0x59   : > { %s402_s13 = sshll.u32 %s395_s17, 4  ;;  %s1851_s2 = scalar_lea.hbm %s2027_s1, %s1131_s25  ;;  %s1842_s13 = int_to_ptr.vmem [resolvable:$true] %s402_s13 }
  0x5a   : > { %s409_s29 = sand.u32 1, %s1648_s20   ;;  %s392_s12 = scalar_lea.sflag [#allocation3], %s391_s22 }
  0x5b   : > { %s1542_s3 = scalar_lea.hbm %s1839_s26, 128  ;;  %p1544_p0 = pneg %p1844_p5 }
  0x5c   : > { %p1543_p13 = scmp.ne.s32.totalorder %s1839_s26, %s1542_s3  ;;  %s1547_s7 = scalar_lea.hbm %s2026_s0, 256 }
  0x5d   : > { %p1548_p3 = scmp.lt.s32.totalorder %s1839_s26, %s2026_s0  ;;  %p1549_p6 = scmp.lt.s32.totalorder %s1547_s7, %s1542_s3 }
  0x5e   : > { %p1545_p2 = pnand %p1544_p0, %p1543_p13 }
  0x5f   : > { %p1550_p4 = por %p1549_p6, %p1548_p3 }
  0x60   : > { %p1546_p1 = pneg %p1545_p2 }
  0x62   : > { %p1551_p7 = pnand %p1550_p4, %p1546_p1 }
  0x64   : > { %1554 = shalt.err (!%p1551_p7)
}
  0x65   : > { %s1555_s22 = scalar_lea.vmem %s1842_s13, 128  ;;  %s1659_s5 = smov [#allocation2]  }
  0x66   : > { %p1556_p8 = scmp.ne.s32.totalorder %s1842_s13, %s1555_s22  ;;  %s1560_s25 = sshll.u32 %s1659_s5, 4  ;;  %s1561_s25 = int_to_ptr.vmem [resolvable:$false] %s1560_s25 }
  0x67   : > { %s1562_s16 = scalar_lea.vmem %s1561_s25, 256  ;;  %p1563_p12 = scmp.lt.s32.totalorder %s1842_s13, %s1561_s25 }
  0x68   : > { %p1558_p10 = pnand %p1556_p8, %p1544_p0  ;;  %p1564_p13 = scmp.lt.s32.totalorder %s1562_s16, %s1555_s22 }
  0x6a   : > { %p1559_p9 = pneg %p1558_p10  ;;  %p1565_p2 = por %p1564_p13, %p1563_p12 }
  0x6c   : > { %p1566_p3 = pnand %p1565_p2, %p1559_p9 }
  0x6e   : > { %1569 = shalt.err (!%p1566_p3)
}
  0x6f   : > { %1350 = dma.hbm_to_vmem [thread:$0]  (!%p1844_p5), %s1839_s26, 128, %s1842_s13, %s392_s12  }
  0x70   : > { %s413_s3 = scalar_lea.vmem [#allocation4], %s1833_s15  ;;  %s410_s9 = scalar_lea.sflag [#allocation5], %s409_s29 }
  0x71   : > { %s420_s7 = sshll.u32 %s413_s3, 4  ;;  %s1570_s17 = scalar_lea.hbm %s1851_s2, 128  ;;  %s421_s7 = int_to_ptr.vmem [resolvable:$true] %s420_s7 }
  0x72   : > { %p1571_p1 = scmp.ne.s32.totalorder %s1851_s2, %s1570_s17  ;;  %s1575_s5 = scalar_lea.hbm %s2027_s1, 256 }
  0x73   : > { %p1576_p7 = scmp.lt.s32.totalorder %s1851_s2, %s2027_s1  ;;  %p1577_p8 = scmp.lt.s32.totalorder %s1575_s5, %s1570_s17 }
  0x74   : > { %p1573_p6 = pnand %p1571_p1, %p1544_p0 }
  0x75   : > { %p1578_p10 = por %p1577_p8, %p1576_p7 }
  0x76   : > { %p1574_p4 = pneg %p1573_p6 }
  0x78   : > { %p1579_p9 = pnand %p1578_p10, %p1574_p4 }
  0x7a   : > { %1582 = shalt.err (!%p1579_p9)
}
  0x7b   : > { %s1583_s20 = scalar_lea.vmem %s421_s7, 128  ;;  %s1660_s15 = smov [#allocation4]  }
  0x7c   : > { %p1584_p12 = scmp.ne.s32.totalorder %s421_s7, %s1583_s20  ;;  %s1588_s26 = sshll.u32 %s1660_s15, 4  ;;  %s1589_s26 = int_to_ptr.vmem [resolvable:$false] %s1588_s26 }
  0x7d   : > { %s1590_s13 = scalar_lea.vmem %s1589_s26, 256  ;;  %p1591_p3 = scmp.lt.s32.totalorder %s421_s7, %s1589_s26 }
  0x7e   : > { %p1586_p13 = pnand %p1584_p12, %p1544_p0  ;;  %p1592_p1 = scmp.lt.s32.totalorder %s1590_s13, %s1583_s20 }
  0x80   : > { %p1587_p2 = pneg %p1586_p13  ;;  %p1593_p6 = por %p1592_p1, %p1591_p3 }
  0x82   : > { %p1594_p11 = pnand %p1593_p6, %p1587_p2 }
  0x84   : > { %1597 = shalt.err (!%p1594_p11)
}
  0x85   : > { %1353 = dma.hbm_to_vmem [thread:$0]  (!%p1844_p5), %s1851_s2, 128, %s421_s7, %s410_s9  }
  0x86   : > { %p2057_p4 = scmp.ne.s32.totalorder %s2046_s24, 0 }
  0x87   : > { %s431_s29 = sand.u32 (!%p2057_p4), 1, %s1640_s18   ;;  %p2058_p0 = scmp.ne.s32.totalorder (!%p2057_p4), %s2055_s28, 0 }
  0x88   : > { %429 = sbr.rel (%p2057_p4) target bundleno = 968 (0x3c8), region = 64  ;;  %s1902_s12 = sshll.u32 (!%p2057_p4), %s431_s29, 3 }
  0x89   : > { %s432_s3 = scalar_lea.sflag (!%p2057_p4), [#allocation3], %s431_s29  ;;  %s435_s17 = scalar_lea.vmem (!%p2057_p4), [#allocation2], %s1902_s12 }
  0x8d   : > { %1615 = dma.done.wait (%p2058_p0), %s432_s3, 128  }
  0x8e   : > { %1617 = vsyncadd (%p2058_p0), %s432_s3, 4294967168  ;;  %s440_s2 = sand.u32 1, %s1744_s23   ;;  %s444_s24 = scalar_lea.vmem [#allocation4], %s1902_s12 }
  0x8f   : > { %s441_s14 = scalar_lea.sflag [#allocation5], %s440_s2 }
  0x90   : > { %1619 = dma.done.wait (%p2058_p0), %s441_s14, 128  }
  0x91   : > { %1621 = vsyncadd (%p2058_p0), %s441_s14, 4294967168  ;;  %p2059_p11 = scmp.eq.s32.totalorder %s1744_s23, 0 }
  0x93   : > { %1623 = dma.done.wait (%p2059_p11), [#allocation5], 2048   ;;  %p2060_p5 = pmov %p2059_p11 }
  0x95   : > { %1625 = vsyncadd (%p2060_p5), [#allocation5], 4294965248  ;;  %p2061_p7 = pmov %p2060_p5 }
  0x96   : > { %p2062_p8 = pmov %p2060_p5 }
  0x97   : > { %1627 = dma.done.wait (%p2061_p7), [#allocation8], 2560  }
  0x98   : > { %1629 = vsyncadd (%p2062_p8), [#allocation8], 4294964736  ;;  %p2063_p10 = pmov %p2060_p5 }
  0x99   : > { %p2064_p9 = pmov %p2060_p5 }
  0x9a   : > { %1631 = dma.done.wait (%p2063_p10), [#allocation11], 4096  }
  0x9b   : > { %1633 = vsyncadd (%p2064_p9), [#allocation11], 4294963200  ;;  %v1661_v0 = vmov 0.0   ;;  %v532_v1 = vld [vmem:[#allocation7 + $0x18] sm:$0xff]  ;;  %v531_v2 = vld [vmem:[#allocation7 + $0x10] sm:$0xff]  ;;  %vm533_vm0 = vcmask 130048   ;;  %v685_v34 = vlaneseq }
  0x9c   : > { %601 = vmatprep.mubr.f32.mxu1 %v1661_v0  ;;  %1202 = vmatprep.subr.mxu0 %v1661_v0  ;;  %v530_v3 = vld [vmem:[#allocation7 + $0x8] sm:$0xff]  ;;  %v529_v4 = vld [vmem:[#allocation7] sm:$0xff]  ;;  %v512_v5 = vld [vmem:[%s444_s24] sm:$0xff]  ;;  %vm608_vm1 = vcmask 523264   ;;  %vm1662_vm2 = vmmov 0   ;;  %p507_p12 = scmp.lt.s32.totalorder %s1744_s23, 1 }
  0x9d   : > { %565 = vmatprep.subr.mxu1 %v532_v1  ;;  %v528_v6 = vld [vmem:[#allocation6 + $0x78] sm:$0xff]  ;;  %v527_v7 = vld [vmem:[#allocation6 + $0x70] sm:$0xff]  ;;  %v526_v8 = vld [vmem:[#allocation6 + $0x68] sm:$0xff]  ;;  %v1943_v35 = vshrl.u32 %v685_v34, 7  ;;  %1234 = vmatprep.mubr.msk.f32.mxu0 %vm1662_vm2, %v1661_v0  ;;  %vm985_vm3 = vcmask 15360  }
  0x9e   : > { %566 = vmatpush1.msra.mxu1 %v531_v2  ;;  %v525_v9 = vld [vmem:[#allocation6 + $0x60] sm:$0xff]  ;;  %v524_v10 = vld [vmem:[#allocation6 + $0x58] sm:$0xff]  ;;  %v523_v11 = vld [vmem:[#allocation6 + $0x50] sm:$0xff]  ;;  %s2070_s23 = smov (!%p507_p12, %s1744_s23), 1 }
  0x9f   : > { %567 = vmatprep.subr.mxu1 %v530_v3  ;;  %v719_v12 = vld [vmem:[#allocation9 + $0x78] sm:$0xff]  ;;  %v718_v13 = vld [vmem:[#allocation9 + $0x70] sm:$0xff]  ;;  %v522_v14 = vld [vmem:[#allocation6 + $0x48] sm:$0xff]  ;;  %v687_v36 = vsub.s32 0, %v1943_v35  ;;  %v691_v58 = vsub.s32 1, %v1943_v35  ;;  %s1142_s25 = sshll.u32 %s2070_s23, 3 }
  0xa0   : > { %568 = vmatpush1.msra.mxu1 %v529_v4  ;;  %1203 = vmatpush3.msra.mxu0 %v719_v12  ;;  %v521_v15 = vld [vmem:[#allocation6 + $0x40] sm:$0xff]  ;;  %v717_v16 = vld [vmem:[#allocation9 + $0x68] sm:$0xff]  ;;  %v520_v17 = vld [vmem:[#allocation6 + $0x38] sm:$0xff]  ;;  %s510_s13 = scalar_lea.vmem %s2037_s11, %s1142_s25 }
  0xa1   : > { %1143 = vmatmul.mubr.msk.f32.vlgmr.msra.gmra.mxu1 %vm533_vm0, %v512_v5  ;;  %628 = vmatprep.subr.mxu1 %v528_v6  ;;  %v519_v18 = vld [vmem:[#allocation6 + $0x30] sm:$0xff]  ;;  %v518_v19 = vld [vmem:[#allocation6 + $0x28] sm:$0xff]  ;;  %v517_v20 = vld [vmem:[#allocation6 + $0x20] sm:$0xff] }
  0xa2   : > { %629 = vmatpush1.msra.mxu1 %v527_v7  ;;  %676 = vmatprep.mubr.f32.mxu1 %v1661_v0  ;;  %v516_v21 = vld [vmem:[#allocation6 + $0x18] sm:$0xff]  ;;  %v515_v22 = vld [vmem:[#allocation6 + $0x10] sm:$0xff]  ;;  %v514_v23 = vld [vmem:[#allocation6 + $0x8] sm:$0xff] }
  0xa3   : > { %630 = vmatprep.subr.mxu1 %v526_v8  ;;  %1204 = vmatprep.subr.mxu0 %v1661_v0  ;;  %v513_v24 = vld [vmem:[#allocation6] sm:$0xff]  ;;  %v715_v27 = vld [vmem:[#allocation9 + $0x58] sm:$0xff]  ;;  %v714_v28 = vld [vmem:[#allocation9 + $0x50] sm:$0xff] }
  0xa4   : > { %631 = vmatpush1.msra.mxu1 %v525_v9  ;;  %1205 = vmatpush3.msra.mxu0 %v718_v13  ;;  %v511_v25 = vld [vmem:[%s435_s17] sm:$0xff]  ;;  %v711_v31 = vld [vmem:[#allocation9 + $0x38] sm:$0xff]  ;;  %v710_v32 = vld [vmem:[#allocation9 + $0x30] sm:$0xff] }
  0xa5   : > { %632 = vmatprep.subr.mxu1 %v524_v10  ;;  %1206 = vmatprep.subr.mxu0 %v1661_v0  ;;  %v716_v26 = vld [vmem:[#allocation9 + $0x60] sm:$0xff]  ;;  %v713_v29 = vld [vmem:[#allocation9 + $0x48] sm:$0xff]  ;;  %v707_v40 = vld [vmem:[#allocation9 + $0x18] sm:$0xff] }
  0xa6   : > { %633 = vmatpush1.msra.mxu1 %v523_v11  ;;  %1207 = vmatpush3.msra.mxu0 %v717_v16  ;;  %v712_v30 = vld [vmem:[#allocation9 + $0x40] sm:$0xff]  ;;  %v709_v33 = vld [vmem:[#allocation9 + $0x28] sm:$0xff]  ;;  %v706_v41 = vld [vmem:[#allocation9 + $0x10] sm:$0xff] }
  0xa7   : > { %634 = vmatprep.subr.mxu1 %v522_v14  ;;  %1208 = vmatprep.subr.mxu0 %v1661_v0  ;;  %v708_v37 = vld [vmem:[#allocation9 + $0x20] sm:$0xff]  ;;  %v705_v42 = vld [vmem:[#allocation9 + $0x8] sm:$0xff]  ;;  %v813_v44 = vld [vmem:[#allocation10 + $0x78] sm:$0xff] }
  0xa8   : > { %635 = vmatpush1.msra.mxu1 %v521_v15  ;;  %1209 = vmatpush3.msra.mxu0 %v716_v26  ;;  %v1950_v38 = vld [vmem:[%s2030_s4] sm:$0x3]  ;;  %v812_v45 = vld [vmem:[#allocation10 + $0x70] sm:$0xff]  ;;  %v811_v46 = vld [vmem:[#allocation10 + $0x68] sm:$0xff] }
  0xa9   : > { %636 = vmatprep.subr.mxu1 %v520_v17  ;;  %1210 = vmatprep.subr.mxu0 %v1661_v0  ;;  %v1953_v39 = vrot.slane %v1950_v38, %v687_v36  ;;  %v704_v43 = vld [vmem:[#allocation9] sm:$0xff]  ;;  %v809_v48 = vld [vmem:[#allocation10 + $0x58] sm:$0xff]  ;;  %v808_v49 = vld [vmem:[#allocation10 + $0x50] sm:$0xff]  ;;  %v692_v62 = vrot.slane %v1950_v38, %v691_v58 }
  0xaa   : > { %637 = vmatpush1.msra.mxu1 %v519_v18  ;;  %1211 = vmatpush3.msra.mxu0 %v715_v27  ;;  %v810_v47 = vld [vmem:[#allocation10 + $0x60] sm:$0xff]  ;;  %v807_v50 = vld [vmem:[#allocation10 + $0x48] sm:$0xff]  ;;  %v805_v52 = vld [vmem:[#allocation10 + $0x38] sm:$0xff] }
  0xab   : > { %638 = vmatprep.subr.mxu1 %v518_v19  ;;  %1212 = vmatprep.subr.mxu0 %v1661_v0  ;;  %v806_v51 = vld [vmem:[#allocation10 + $0x40] sm:$0xff]  ;;  %v804_v53 = vld [vmem:[#allocation10 + $0x30] sm:$0xff]  ;;  %v803_v54 = vld [vmem:[#allocation10 + $0x28] sm:$0xff] }
  0xac   : > { %639 = vmatpush1.msra.mxu1 %v517_v20  ;;  %1213 = vmatpush3.msra.mxu0 %v714_v28  ;;  %v802_v55 = vld [vmem:[#allocation10 + $0x20] sm:$0xff]  ;;  %v801_v56 = vld [vmem:[#allocation10 + $0x18] sm:$0xff]  ;;  %v800_v5 = vld [vmem:[#allocation10 + $0x10] sm:$0xff] }
  0xad   : > { %640 = vmatprep.subr.mxu1 %v516_v21  ;;  %1214 = vmatprep.subr.mxu0 %v1661_v0  ;;  %v799_v6 = vld [vmem:[#allocation10 + $0x8] sm:$0xff]  ;;  %v798_v7 = vld [vmem:[#allocation10] sm:$0xff]  ;;  %v907_v8 = vld [vmem:[#allocation12 + $0x78] sm:$0xff] }
  0xae   : > { %641 = vmatpush1.msra.mxu1 %v515_v22  ;;  %1215 = vmatpush3.msra.mxu0 %v713_v29  ;;  %v906_v9 = vld [vmem:[#allocation12 + $0x70] sm:$0xff]  ;;  %v905_v10 = vld [vmem:[#allocation12 + $0x68] sm:$0xff]  ;;  %v904_v11 = vld [vmem:[#allocation12 + $0x60] sm:$0xff] }
  0xaf   : > { %642 = vmatprep.subr.mxu1 %v514_v23  ;;  %1216 = vmatprep.subr.mxu0 %v1661_v0  ;;  %v903_v12 = vld [vmem:[#allocation12 + $0x58] sm:$0xff]  ;;  %v902_v13 = vld [vmem:[#allocation12 + $0x50] sm:$0xff]  ;;  %v901_v14 = vld [vmem:[#allocation12 + $0x48] sm:$0xff] }
  0xb0   : > { %643 = vmatpush1.msra.mxu1 %v513_v24  ;;  %1217 = vmatpush3.msra.mxu0 %v712_v30  ;;  %v900_v15 = vld [vmem:[#allocation12 + $0x40] sm:$0xff]  ;;  %v899_v16 = vld [vmem:[#allocation12 + $0x38] sm:$0xff]  ;;  %v898_v17 = vld [vmem:[#allocation12 + $0x30] sm:$0xff] }
  0xb1   : > { %1144 = vmatmul.mubr.msk.f32.vlgmr.msra.gmra.mxu1 %vm608_vm1, %v511_v25  ;;  %1237 = vmatprep.subr.mxu1 %v1661_v0  ;;  %v897_v18 = vld [vmem:[#allocation12 + $0x28] sm:$0xff]  ;;  %v896_v19 = vld [vmem:[#allocation12 + $0x20] sm:$0xff]  ;;  %v895_v20 = vld [vmem:[#allocation12 + $0x18] sm:$0xff] }
  0xb2   : > { %1218 = vmatprep.subr.mxu0 %v1661_v0  ;;  %1269 = vmatprep.mubr.msk.f32.mxu1 %vm1662_vm2, %v1661_v0  ;;  %v1146_v24 = vld [vmem:[%s2032_s6] ss:$0 sm:$0xff]  ;;  %v894_v30 = vld [vmem:[#allocation12 + $0x10] sm:$0xff] }
  0xb3   : > { %1219 = vmatpush3.msra.mxu0 %v711_v31  ;;  %1238 = vmatpush3.msra.mxu1 %v813_v44  ;;  %v893_v31 = vld [vmem:[#allocation12 + $0x8] sm:$0xff]  ;;  %v1148_v38 = vld [vmem:[%s2036_s10] ss:$0 sm:$0xff] }
  0xb4   : > { %1220 = vmatprep.subr.mxu0 %v1661_v0  ;;  %1239 = vmatprep.subr.mxu1 %v1661_v0 }
  0xb5   : > { %1221 = vmatpush3.msra.mxu0 %v710_v32  ;;  %1240 = vmatpush3.msra.mxu1 %v812_v45  ;;  %v892_v32 = vld [vmem:[#allocation12] sm:$0xff] }
  0xb6   : > { %1222 = vmatprep.subr.mxu0 %v1661_v0  ;;  %1241 = vmatprep.subr.mxu1 %v1661_v0 }
  0xb7   : > { %1223 = vmatpush3.msra.mxu0 %v709_v33  ;;  %1242 = vmatpush3.msra.mxu1 %v811_v46  ;;  %v1147_v33 = vld [vmem:[%s2034_s8] ss:$0 sm:$0xff] }
  0xb8   : > { %1224 = vmatprep.subr.mxu0 %v1661_v0  ;;  %1243 = vmatprep.subr.mxu1 %v1661_v0 }
  0xb9   : > { %1225 = vmatpush3.msra.mxu0 %v708_v37  ;;  %1244 = vmatpush3.msra.mxu1 %v810_v47 }
  0xba   : > { %1226 = vmatprep.subr.mxu0 %v1661_v0  ;;  %1245 = vmatprep.subr.mxu1 %v1661_v0 }
  0xbb   : > { %1227 = vmatpush3.msra.mxu0 %v707_v40  ;;  %1246 = vmatpush3.msra.mxu1 %v809_v48 }
  0xbc   : > { %1228 = vmatprep.subr.mxu0 %v1661_v0  ;;  %1247 = vmatprep.subr.mxu1 %v1661_v0 }
  0xbd   : > { %1229 = vmatpush3.msra.mxu0 %v706_v41  ;;  %1248 = vmatpush3.msra.mxu1 %v808_v49 }
  0xbe   : > { %1230 = vmatprep.subr.mxu0 %v1661_v0  ;;  %1249 = vmatprep.subr.mxu1 %v1661_v0 }
  0xbf   : > { %1231 = vmatpush3.msra.mxu0 %v705_v42  ;;  %1250 = vmatpush3.msra.mxu1 %v807_v50 }
  0xc0   : > { %1232 = vmatprep.subr.mxu0 %v1661_v0  ;;  %1251 = vmatprep.subr.mxu1 %v1661_v0 }
  0xc1   : > { %1233 = vmatpush3.msra.mxu0 %v704_v43  ;;  %1252 = vmatpush3.msra.mxu1 %v806_v51 }
  0xc2   : > { %1272 = vmatprep.subr.mxu0 %v1661_v0  ;;  %1253 = vmatprep.subr.mxu1 %v1661_v0 }
  0xc3   : > { %1254 = vmatpush3.msra.mxu1 %v805_v52 }
  0xc4   : > { %1255 = vmatprep.subr.mxu1 %v1661_v0 }
  0xc5   : > { %1256 = vmatpush3.msra.mxu1 %v804_v53 }
  0xc6   : > { %1257 = vmatprep.subr.mxu1 %v1661_v0 }
  0xc7   : > { %1258 = vmatpush3.msra.mxu1 %v803_v54 }
  0xc8   : > { %1259 = vmatprep.subr.mxu1 %v1661_v0 }
  0xc9   : > { %1260 = vmatpush3.msra.mxu1 %v802_v55 }
  0xca   : > { %1261 = vmatprep.subr.mxu1 %v1661_v0 }
  0xcb   : > { %1262 = vmatpush3.msra.mxu1 %v801_v56 }
  0xcc   : > { %1263 = vmatprep.subr.mxu1 %v1661_v0 }
  0xcd   : > { %1264 = vmatpush3.msra.mxu1 %v800_v5 }
  0xce   : > { %1265 = vmatprep.subr.mxu1 %v1661_v0 }
  0xcf   : > { %1266 = vmatpush3.msra.mxu1 %v799_v6 }
  0xd0   : > { %1267 = vmatprep.subr.mxu1 %v1661_v0 }
  0xd1   : > { %1268 = vmatpush3.msra.mxu1 %v798_v7 }
 0x161   : > { %v603_v57 = vpop.f32.mrf.mxu1 }
 0x163   : > { %v605_v59 = vpop.f32.mrf.mxu1 }
 0x171   : > { %v678_v60 = vpop.f32.mrf.mxu1 }
 0x172   : > { %v679_v61 = vadd.f32 %v678_v60, %v603_v57 }
 0x173   : > { %v680_v63 = vpop.f32.mrf.mxu1 }
 0x174   : > { %v695_v1 = vadd.f32 %v1953_v39, %v679_v61  ;;  %v681_v2 = vadd.f32 %v680_v63, %v605_v59 }
 0x176   : > { %v696_v3 = vadd.f32 %v692_v62, %v681_v2  ;;  %v1145_v21 = vmul.f32 -1.442695, %v695_v1 }
 0x178   : > { %v703_v4 = vmax.f32 %v696_v3, 0.0  ;;  %1408 = vpow2.f32 %v1145_v21 }
 0x17a   : > { %1235 = vmatmul.mubr.f32.vlgmr.msra.gmra.mxu0 %v703_v4 }
 0x17b   : > { %1304 = vmatprep.mubr.msk.f32.mxu0 %vm1662_vm2, %v1661_v0  ;;  %1273 = vmatpush3.msra.mxu0 %v907_v8 }
 0x17c   : > { %1274 = vmatprep.subr.mxu0 %v1661_v0 }
 0x17d   : > { %1275 = vmatpush3.msra.mxu0 %v906_v9 }
 0x17e   : > { %1276 = vmatprep.subr.mxu0 %v1661_v0 }
 0x17f   : > { %1277 = vmatpush3.msra.mxu0 %v905_v10 }
 0x180   : > { %1278 = vmatprep.subr.mxu0 %v1661_v0 }
 0x181   : > { %1279 = vmatpush3.msra.mxu0 %v904_v11 }
 0x182   : > { %1280 = vmatprep.subr.mxu0 %v1661_v0 }
 0x183   : > { %1281 = vmatpush3.msra.mxu0 %v903_v12 }
 0x184   : > { %1282 = vmatprep.subr.mxu0 %v1661_v0 }
 0x185   : > { %1283 = vmatpush3.msra.mxu0 %v902_v13  ;;  %v1409_v22 = vpop.eup %1408 }
 0x186   : > { %1284 = vmatprep.subr.mxu0 %v1661_v0  ;;  %v700_v23 = vadd.f32 1.0, %v1409_v22 }
 0x187   : > { %1285 = vmatpush3.msra.mxu0 %v901_v14 }
 0x188   : > { %1286 = vmatprep.subr.mxu0 %v1661_v0  ;;  %1410 = vrcp.f32 %v700_v23 }
 0x189   : > { %1287 = vmatpush3.msra.mxu0 %v900_v15 }
 0x18a   : > { %1288 = vmatprep.subr.mxu0 %v1661_v0 }
 0x18b   : > { %1289 = vmatpush3.msra.mxu0 %v899_v16 }
 0x18c   : > { %1290 = vmatprep.subr.mxu0 %v1661_v0 }
 0x18d   : > { %1291 = vmatpush3.msra.mxu0 %v898_v17 }
 0x18e   : > { %1292 = vmatprep.subr.mxu0 %v1661_v0 }
 0x18f   : > { %1293 = vmatpush3.msra.mxu0 %v897_v18 }
 0x190   : > { %1294 = vmatprep.subr.mxu0 %v1661_v0 }
 0x191   : > { %1295 = vmatpush3.msra.mxu0 %v896_v19 }
 0x192   : > { %1296 = vmatprep.subr.mxu0 %v1661_v0 }
 0x193   : > { %1297 = vmatpush3.msra.mxu0 %v895_v20 }
 0x194   : > { %1298 = vmatprep.subr.mxu0 %v1661_v0 }
 0x195   : > { %v1411_v27 = vpop.eup %1410  ;;  %1299 = vmatpush3.msra.mxu0 %v894_v30 }
 0x196   : > { %1300 = vmatprep.subr.mxu0 %v1661_v0 }
 0x197   : > { %1301 = vmatpush3.msra.mxu0 %v893_v31 }
 0x198   : > { %1302 = vmatprep.subr.mxu0 %v1661_v0 }
 0x199   : > { %1303 = vmatpush3.msra.mxu0 %v892_v32 }
 0x23a   : > { %v793_v25 = vpop.f32.mrf.mxu0 }
 0x23b   : > { %v794_v26 = vadd.f32 %v1146_v24, %v793_v25 }
 0x23c   : > { %v1236_v28 = vpop.f32.mrf.mxu0 }
 0x23d   : > { %v797_v29 = vmul.f32 %v1411_v27, %v794_v26 }
 0x23f   : > { %1270 = vmatmul.mubr.f32.vlgmr.msra.gmra.mxu1 %v797_v29 }
 0x2ff   : > { %v887_v34 = vpop.f32.mrf.mxu1 }
 0x300   : > { %v888_v35 = vadd.f32 %v1147_v33, %v887_v34 }
 0x301   : > { %v1271_v36 = vpop.f32.mrf.mxu1 }
 0x302   : > { %v891_v37 = vmax.f32 %v888_v35, 0.0 }
 0x304   : > { %1305 = vmatmul.mubr.f32.vlgmr.msra.gmra.mxu0 %v891_v37 }
 0x3c4   : > { %v981_v0 = vpop.f32.mrf.mxu0 }
 0x3c5   : > { %v982_v39 = vadd.f32 %v1148_v38, %v981_v0 }
 0x3c6   : > { %v1306_v40 = vpop.f32.mrf.mxu0 }
 0x3c7   : > { %986 = vst.msk [vmem:[%s510_s13] sm:$0xff] %vm985_vm3, %v982_v39 }
 0x3c8 PF: > { %p26_p13 = scmp.ge.s32.totalorder %s1812_s27, 4   ;;  %s2065_s17 = smov %s1640_s18 }
 0x3c9   : > { %s2066_s18 = smov %s1644_s19  ;;  %s2067_s19 = smov %s1823_s21 }
 0x3ca   : > { %s2068_s20 = smov %s1812_s27  ;;  %28 = sbr.rel (!%p26_p13) target bundleno = 13 (0xd), region = 137 }
 0x3cf   :  { %1006 = vsyncpa [#allocation3], 1 }
 0x3d0   :  { %1008 = vsyncpa [#allocation3 + $0x1], 1 }
 0x3d1   :  { %1009 = vsyncpa [#allocation5], 1 }
 0x3d2   :  { %1011 = vsyncpa [#allocation5 + $0x1], 1 }
 0x3d3   :  { %1012 = vsyncpa [#allocation8], 1 }
 0x3d4   :  { %1013 = vsyncpa [#allocation11], 1 }

</bundles_post_ra>
